<compile_context>
chip_gen: v5e
topology: v5e:2x2
jax: 0.10.0
libtpu: 0.0.40
codegen_flags: <defaults>
</compile_context>

<pallas_src>
import functools

import numpy as np
import jax
import jax.numpy as jnp
from jax.experimental import pallas as pl
from jax.experimental.pallas import tpu as pltpu


# ----------------------------------------------------------------------------
# Bilinear interpolation matrices (align_corners=True), matching
# F.interpolate(mode='bilinear', align_corners=True).
# ----------------------------------------------------------------------------
def _interp_matrix(out_size: int, in_size: int) -> np.ndarray:
    if in_size == 1:
        return np.ones((out_size, 1), np.float32)
    if out_size == 1:
        m = np.zeros((1, in_size), np.float32)
        m[0, 0] = 1.0
        return m
    src = np.arange(out_size, dtype=np.float64) * (in_size - 1) / (out_size - 1)
    lo = np.clip(np.floor(src).astype(np.int64), 0, in_size - 2)
    frac = (src - lo).astype(np.float32)
    m = np.zeros((out_size, in_size), np.float32)
    m[np.arange(out_size), lo] = 1.0 - frac
    m[np.arange(out_size), lo + 1] = frac
    return m


# ----------------------------------------------------------------------------
# Fused kernel: resize (as one matmul) + normalize + discrepancy + reductions.
# One grid step per batch element; writes per-batch partial sums.
# ----------------------------------------------------------------------------
def _cdo_scale_kernel(fe_ref, fa_ref, at_ref, s0_ref, s1_ref, s2_ref, *,
                      gamma, oom):
    # fe_ref/fa_ref: (1, C, H*W)   at_ref: (H*W, H0*W0)
    # s*_ref: (1, 8, 128) per-batch partial-sum blocks (scalar broadcast).
    fe = fe_ref[0].astype(jnp.float32)                      # (C, HW)
    fa = fa_ref[0].astype(jnp.float32)
    at = at_ref[...]                                        # (HW, NPIX)

    # Resize folded in as matmuls: channels on sublanes, pixels on lanes.
    fe_r = jnp.dot(fe, at, preferred_element_type=jnp.float32)   # (C, NPIX)
    fa_r = jnp.dot(fa, at, preferred_element_type=jnp.float32)

    # F.normalize(p=2, dim=channel): x / max(||x||, eps)  ==  x * rsqrt(max(ss, eps^2))
    eps2 = jnp.float32(1e-24)
    inv_e = jax.lax.rsqrt(jnp.maximum(jnp.sum(fe_r * fe_r, axis=0, keepdims=True), eps2))
    inv_a = jax.lax.rsqrt(jnp.maximum(jnp.sum(fa_r * fa_r, axis=0, keepdims=True), eps2))
    diff = fe_r * inv_e - fa_r * inv_a
    d_p = jnp.sum(diff * diff, axis=0, keepdims=True)       # (1, NPIX) lane-dense

    s0 = jnp.sum(d_p)                                       # sum(d_p)
    if oom:
        d_g = d_p ** gamma
        s1 = jnp.sum(d_g)                                   # sum(d_p**gamma)
        s2 = jnp.sum(d_g * d_p)                             # sum(d_p**(gamma+1))
    else:
        s1 = jnp.float32(d_p.shape[1])                      # sum(w) with w == 1
        s2 = s0

    s0_ref[...] = jnp.full(s0_ref.shape, s0, jnp.float32)
    s1_ref[...] = jnp.full(s1_ref.shape, s1, jnp.float32)
    s2_ref[...] = jnp.full(s2_ref.shape, s2, jnp.float32)


def cdo_scale_sums(fe, fa, h0, w0, *, gamma, oom):
    """fe, fa: (B, C, H, W).  Returns (S0, S1, S2) summed over all pixels.

    S0 = sum(d_p), S1 = sum(d_p**gamma), S2 = sum(d_p**(gamma+1))  (oom=True)
    For oom=False: S1 = #pixels, S2 = S0.
    """
    b, c, h, w = fe.shape
    # TODO(synk): for very large spatial sizes the kron matrix (H*W, H0*W0)
    # would not fit VMEM; a separable two-matmul + pixel-tiled variant would be
    # needed there.  Fine for the feature-pyramid sizes used here.
    a_t = jnp.asarray(
        np.kron(_interp_matrix(h0, h), _interp_matrix(w0, w)).T)   # (H*W, H0*W0)
    fe_flat = fe.reshape(b, c, h * w)     # free: contiguous reshape, no cast
    fa_flat = fa.reshape(b, c, h * w)

    kernel = functools.partial(_cdo_scale_kernel, gamma=gamma, oom=oom)
    out_sh = jax.ShapeDtypeStruct((b, 8, 128), jnp.float32)
    s0, s1, s2 = pl.pallas_call(
        kernel,
        out_shape=(out_sh, out_sh, out_sh),
        grid_spec=pltpu.PrefetchScalarGridSpec(
            num_scalar_prefetch=0,
            grid=(b,),
            in_specs=[
                pl.BlockSpec((1, c, h * w), lambda i: (i, 0, 0)),
                pl.BlockSpec((1, c, h * w), lambda i: (i, 0, 0)),
                pl.BlockSpec((h * w, h0 * w0), lambda i: (0, 0)),
            ],
            out_specs=[
                pl.BlockSpec((1, 8, 128), lambda i: (i, 0, 0)),
                pl.BlockSpec((1, 8, 128), lambda i: (i, 0, 0)),
                pl.BlockSpec((1, 8, 128), lambda i: (i, 0, 0)),
            ],
        ),
        compiler_params=pltpu.CompilerParams(
            dimension_semantics=("parallel",)),   # batch items independent
    )(fe_flat, fa_flat, a_t)
    # Each per-batch block is a scalar broadcast; combine partials in JAX.
    return s0[:, 0, 0].sum(), s1[:, 0, 0].sum(), s2[:, 0, 0].sum()


# ----------------------------------------------------------------------------
# CDOLoss forward
# ----------------------------------------------------------------------------
class CDOLossPallas:
    def __init__(self, gamma: int, OOM: bool, aggregation: bool):
        # TODO(synk): aggregation=False returns a per-pixel map (non-scalar);
        # only the aggregation=True path is implemented here.
        assert aggregation, "only aggregation=True is supported"
        self.gamma = gamma
        self.OOM = OOM
        self.aggregation = aggregation

    def __call__(self, teacher_features, student_features, mask=None):
        # TODO(synk): mask != None requires a dynamic-shape boolean gather of
        # the anomalous pixel subset; only the default mask=None path is
        # implemented (loss_s = weight_s = 0, and the mu**-gamma factor then
        # cancels exactly in loss_n / weight_n).
        assert mask is None
        _, _, h0, w0 = teacher_features[0].shape
        loss = jnp.float32(0.0)
        for fe, fa in zip(teacher_features, student_features):
            b = fe.shape[0]
            _, s1, s2 = cdo_scale_sums(fe, fa, h0, w0,
                                       gamma=self.gamma, oom=self.OOM)
            loss = loss + (s2 / s1) * b
        return loss


# ----------------------------------------------------------------------------
# Pure-JAX reference (literal translation of the PyTorch semantics, mask=None).
# ----------------------------------------------------------------------------
def reference_loss(teacher, student, *, gamma, oom, h0, w0):
    loss = jnp.float32(0.0)
    for fe, fa in zip(teacher, student):
        b, c, h, w = fe.shape
        ah = jnp.asarray(_interp_matrix(h0, h))
        aw = jnp.asarray(_interp_matrix(w0, w))
        fe_r = jnp.einsum('ph,bchw,qw->bcpq', ah, fe.astype(jnp.float32), aw)
        fa_r = jnp.einsum('ph,bchw,qw->bcpq', ah, fa.astype(jnp.float32), aw)
        fe2 = fe_r.transpose(0, 2, 3, 1).reshape(-1, c)
        fa2 = fa_r.transpose(0, 2, 3, 1).reshape(-1, c)
        fe2 = fe2 / jnp.maximum(jnp.linalg.norm(fe2, axis=1, keepdims=True), 1e-12)
        fa2 = fa2 / jnp.maximum(jnp.linalg.norm(fa2, axis=1, keepdims=True), 1e-12)
        d_p = jnp.sum((fe2 - fa2) ** 2, axis=1)
        if oom:
            mu = jnp.mean(d_p)
            w_ = (d_p / mu) ** gamma
        else:
            w_ = jnp.ones_like(d_p)
        loss = loss + jnp.sum(d_p * w_) / jnp.sum(w_) * b
    return loss


if __name__ == "__main__":
    key = jax.random.PRNGKey(0)
    B, C = 2, 16
    shapes = [(B, C, 16, 16), (B, C, 8, 8), (B, C, 4, 4)]   # multi-scale features
    keys = jax.random.split(key, 2 * len(shapes))
    teacher = [jax.random.normal(keys[2 * i], s, jnp.float32) for i, s in enumerate(shapes)]
    student = [jax.random.normal(keys[2 * i + 1], s, jnp.float32) for i, s in enumerate(shapes)]

    loss_fn = CDOLossPallas(gamma=2, OOM=True, aggregation=True)
    loss = loss_fn(teacher, student)
    jax.block_until_ready(loss)

    ref = reference_loss(teacher, student, gamma=2, oom=True, h0=16, w0=16)
    np.testing.assert_allclose(float(loss), float(jax.block_until_ready(ref)),
                               rtol=1e-4, atol=1e-5)
    print("KERNEL_OK")
</pallas_src>

<mosaic_0001>
module attributes {stable_mosaic.version = 11 : i64} {
  func.func @_cdo_scale_kernel(%arg0: i32, %arg1: memref<1x16x256xf32, #tpu.memory_space<vmem>>, %arg2: memref<1x16x256xf32, #tpu.memory_space<vmem>>, %arg3: memref<256x256xf32, #tpu.memory_space<vmem>>, %arg4: memref<1x8x128xf32, #tpu.memory_space<vmem>>, %arg5: memref<1x8x128xf32, #tpu.memory_space<vmem>>, %arg6: memref<1x8x128xf32, #tpu.memory_space<vmem>>) attributes {dimension_semantics = [#tpu.dimension_semantics<parallel>], iteration_bounds = array<i64: 2>, scalar_prefetch = 0 : i64, scratch_operands = 0 : i64, tpu.core_type = #tpu.core_type<tc>, window_params = [{transform_indices = @transform_0, window_bounds = array<i64: 1, 16, 256>}, {transform_indices = @transform_1, window_bounds = array<i64: 1, 16, 256>}, {pipeline_mode = #tpu.pipeline_mode<synchronous>, transform_indices = @transform_2, window_bounds = array<i64: 256, 256>}, {transform_indices = @transform_3, window_bounds = array<i64: 1, 8, 128>}, {transform_indices = @transform_4, window_bounds = array<i64: 1, 8, 128>}, {transform_indices = @transform_5, window_bounds = array<i64: 1, 8, 128>}]} {
    %c0 = arith.constant 0 : index
    %c0_0 = arith.constant 0 : index
    %c0_1 = arith.constant 0 : index
    %0 = vector.load %arg1[%c0, %c0_0, %c0_1] : memref<1x16x256xf32, #tpu.memory_space<vmem>>, vector<1x16x256xf32>
    %1 = vector.shape_cast %0 : vector<1x16x256xf32> to vector<16x256xf32>
    %c0_2 = arith.constant 0 : index
    %c0_3 = arith.constant 0 : index
    %c0_4 = arith.constant 0 : index
    %2 = vector.load %arg2[%c0_2, %c0_3, %c0_4] : memref<1x16x256xf32, #tpu.memory_space<vmem>>, vector<1x16x256xf32>
    %3 = vector.shape_cast %2 : vector<1x16x256xf32> to vector<16x256xf32>
    %c0_5 = arith.constant 0 : index
    %c0_6 = arith.constant 0 : index
    %4 = vector.load %arg3[%c0_5, %c0_6] : memref<256x256xf32, #tpu.memory_space<vmem>>, vector<256x256xf32>
    %cst = arith.constant dense<0.000000e+00> : vector<16x256xf32>
    %5 = tpu.matmul %1, %4, %cst {dimension_numbers = #tpu.dot_dimension_numbers<[1], [0], [0], [1], [0, 0, 1, 1], [], []>} : vector<16x256xf32>, vector<256x256xf32>, vector<16x256xf32> -> vector<16x256xf32>
    %cst_7 = arith.constant dense<0.000000e+00> : vector<16x256xf32>
    %6 = tpu.matmul %3, %4, %cst_7 {dimension_numbers = #tpu.dot_dimension_numbers<[1], [0], [0], [1], [0, 0, 1, 1], [], []>} : vector<16x256xf32>, vector<256x256xf32>, vector<16x256xf32> -> vector<16x256xf32>
    %7 = arith.mulf %5, %5 : vector<16x256xf32>
    %cst_8 = arith.constant dense<0.000000e+00> : vector<256xf32>
    %8 = vector.multi_reduction <add>, %7, %cst_8 [0] : vector<16x256xf32> to vector<256xf32>
    %9 = vector.shape_cast %8 : vector<256xf32> to vector<1x256xf32>
    %cst_9 = arith.constant 1.000000e-24 : f32
    %10 = vector.broadcast %cst_9 : f32 to vector<1x256xf32>
    %11 = arith.maximumf %9, %10 : vector<1x256xf32>
    %12 = math.rsqrt %11 : vector<1x256xf32>
    %13 = arith.mulf %6, %6 : vector<16x256xf32>
    %cst_10 = arith.constant dense<0.000000e+00> : vector<256xf32>
    %14 = vector.multi_reduction <add>, %13, %cst_10 [0] : vector<16x256xf32> to vector<256xf32>
    %15 = vector.shape_cast %14 : vector<256xf32> to vector<1x256xf32>
    %cst_11 = arith.constant 1.000000e-24 : f32
    %16 = vector.broadcast %cst_11 : f32 to vector<1x256xf32>
    %17 = arith.maximumf %15, %16 : vector<1x256xf32>
    %18 = math.rsqrt %17 : vector<1x256xf32>
    %19 = vector.broadcast %12 : vector<1x256xf32> to vector<16x256xf32>
    %20 = arith.mulf %5, %19 : vector<16x256xf32>
    %21 = vector.broadcast %18 : vector<1x256xf32> to vector<16x256xf32>
    %22 = arith.mulf %6, %21 : vector<16x256xf32>
    %23 = arith.subf %20, %22 : vector<16x256xf32>
    %24 = arith.mulf %23, %23 : vector<16x256xf32>
    %cst_12 = arith.constant dense<0.000000e+00> : vector<256xf32>
    %25 = vector.multi_reduction <add>, %24, %cst_12 [0] : vector<16x256xf32> to vector<256xf32>
    %26 = vector.shape_cast %25 : vector<256xf32> to vector<1x256xf32>
    %27 = vector.shape_cast %26 : vector<1x256xf32> to vector<1x1x256xf32>
    %cst_13 = arith.constant dense<0.000000e+00> : vector<1xf32>
    %28 = vector.multi_reduction <add>, %27, %cst_13 [1, 2] : vector<1x1x256xf32> to vector<1xf32>
    %29 = vector.shape_cast %28 : vector<1xf32> to vector<1x1x1xf32>
    %30 = vector.extract %29[0, 0, 0] : f32 from vector<1x1x1xf32>
    %31 = arith.mulf %26, %26 : vector<1x256xf32>
    %32 = vector.shape_cast %31 : vector<1x256xf32> to vector<1x1x256xf32>
    %cst_14 = arith.constant dense<0.000000e+00> : vector<1xf32>
    %33 = vector.multi_reduction <add>, %32, %cst_14 [1, 2] : vector<1x1x256xf32> to vector<1xf32>
    %34 = vector.shape_cast %33 : vector<1xf32> to vector<1x1x1xf32>
    %35 = vector.extract %34[0, 0, 0] : f32 from vector<1x1x1xf32>
    %36 = arith.mulf %31, %26 : vector<1x256xf32>
    %37 = vector.shape_cast %36 : vector<1x256xf32> to vector<1x1x256xf32>
    %cst_15 = arith.constant dense<0.000000e+00> : vector<1xf32>
    %38 = vector.multi_reduction <add>, %37, %cst_15 [1, 2] : vector<1x1x256xf32> to vector<1xf32>
    %39 = vector.shape_cast %38 : vector<1xf32> to vector<1x1x1xf32>
    %40 = vector.extract %39[0, 0, 0] : f32 from vector<1x1x1xf32>
    %41 = vector.broadcast %30 : f32 to vector<1x8x128xf32>
    %c0_16 = arith.constant 0 : index
    %c0_17 = arith.constant 0 : index
    %c0_18 = arith.constant 0 : index
    %42 = vector.load %arg4[%c0_16, %c0_17, %c0_18] : memref<1x8x128xf32, #tpu.memory_space<vmem>>, vector<1x8x128xf32>
    tpu.vector_store %arg4[%c0_16, %c0_17, %c0_18], %41 {strides = array<i32>} : memref<1x8x128xf32, #tpu.memory_space<vmem>>, vector<1x8x128xf32>,
    %43 = vector.broadcast %35 : f32 to vector<1x8x128xf32>
    %c0_19 = arith.constant 0 : index
    %c0_20 = arith.constant 0 : index
    %c0_21 = arith.constant 0 : index
    %44 = vector.load %arg5[%c0_19, %c0_20, %c0_21] : memref<1x8x128xf32, #tpu.memory_space<vmem>>, vector<1x8x128xf32>
    tpu.vector_store %arg5[%c0_19, %c0_20, %c0_21], %43 {strides = array<i32>} : memref<1x8x128xf32, #tpu.memory_space<vmem>>, vector<1x8x128xf32>,
    %45 = vector.broadcast %40 : f32 to vector<1x8x128xf32>
    %c0_22 = arith.constant 0 : index
    %c0_23 = arith.constant 0 : index
    %c0_24 = arith.constant 0 : index
    %46 = vector.load %arg6[%c0_22, %c0_23, %c0_24] : memref<1x8x128xf32, #tpu.memory_space<vmem>>, vector<1x8x128xf32>
    tpu.vector_store %arg6[%c0_22, %c0_23, %c0_24], %45 {strides = array<i32>} : memref<1x8x128xf32, #tpu.memory_space<vmem>>, vector<1x8x128xf32>,
    return
  }
  func.func @transform_0(%arg0: i32) -> (i32, i32, i32) {
    %c0_i32 = arith.constant 0 : i32
    %c0_i32_0 = arith.constant 0 : i32
    %c0_i32_1 = arith.constant 0 : i32
    return %arg0, %c0_i32, %c0_i32_0 : i32, i32, i32
  }
  func.func @transform_1(%arg0: i32) -> (i32, i32, i32) {
    %c0_i32 = arith.constant 0 : i32
    %c0_i32_0 = arith.constant 0 : i32
    %c0_i32_1 = arith.constant 0 : i32
    return %arg0, %c0_i32, %c0_i32_0 : i32, i32, i32
  }
  func.func @transform_2(%arg0: i32) -> (i32, i32) {
    %c0_i32 = arith.constant 0 : i32
    %c0_i32_0 = arith.constant 0 : i32
    %c0_i32_1 = arith.constant 0 : i32
    return %c0_i32, %c0_i32_0 : i32, i32
  }
  func.func @transform_3(%arg0: i32) -> (i32, i32, i32) {
    %c0_i32 = arith.constant 0 : i32
    %c0_i32_0 = arith.constant 0 : i32
    %c0_i32_1 = arith.constant 0 : i32
    return %arg0, %c0_i32, %c0_i32_0 : i32, i32, i32
  }
  func.func @transform_4(%arg0: i32) -> (i32, i32, i32) {
    %c0_i32 = arith.constant 0 : i32
    %c0_i32_0 = arith.constant 0 : i32
    %c0_i32_1 = arith.constant 0 : i32
    return %arg0, %c0_i32, %c0_i32_0 : i32, i32, i32
  }
  func.func @transform_5(%arg0: i32) -> (i32, i32, i32) {
    %c0_i32 = arith.constant 0 : i32
    %c0_i32_0 = arith.constant 0 : i32
    %c0_i32_1 = arith.constant 0 : i32
    return %arg0, %c0_i32, %c0_i32_0 : i32, i32, i32
  }
}

</mosaic_0001>

<bundles_post_ra>
// kernel: tpu_custom_call.1
= control target key start
LH: loop header
LB: loop body
LE: loop exit
PB: predicated region body
PF: predicated region fallthrough
CT: control target
= control target key end

     0   :  { %s1867_s0 = inlined_call_operand.hbm [shape: f32[2,16,256], index: 0, kind: input, shape index: {}]   ;;  %s1868_s1 = inlined_call_operand.hbm [shape: f32[2,16,256], index: 1, kind: input, shape index: {}]   ;;  %s1869_s2 = inlined_call_operand.hbm [shape: f32[256,256], index: 2, kind: input, shape index: {}]   ;;  %s1870_s3 = inlined_call_operand.hbm [shape: f32[2,8,128], index: 3, kind: output, shape index: {0}]   ;;  %s1871_s4 = inlined_call_operand.hbm [shape: f32[2,8,128], index: 4, kind: output, shape index: {1}]   ;;  %s1872_s5 = inlined_call_operand.hbm [shape: f32[2,8,128], index: 5, kind: output, shape index: {2}]  }
   0x1   :  { %1881 = sst [smem:[#allocation20_spill]] %s1867_s0 }
   0x2   :  { %1882 = sst [smem:[#allocation21_spill]] %s1869_s2 }
   0x3   :  { %11 = vsyncpa [#allocation3], 0 }
   0x4   :  { %13 = vsyncpa [#allocation3 + $0x1], 0 }
   0x5   :  { %14 = vsyncpa [#allocation6], 0 }
   0x6   :  { %16 = vsyncpa [#allocation6 + $0x1], 0 }
   0x7   :  { %17 = vsyncpa [#allocation4], 0 }
   0x8   :  { %19 = vsyncpa [#allocation4 + $0x1], 0 }
   0x9   :  { %20 = vsyncpa [#allocation10], 0 }
   0xa   :  { %22 = vsyncpa [#allocation10 + $0x1], 0  ;;  %s1327_s18 = smov 0   ;;  %s1329_s19 = smov 0  }
   0xb   :  { %s1331_s20 = smov 0   ;;  %s1333_s21 = smov 0  }
   0xc LB: > { %s1348_s22 = sadd.s32 4294967295, %s1292_s21   ;;  %s1873_s23 = sadd.s32 4294967294, %s1292_s21   ;;  %s1292_s21 = sphi %s1333_s21, %s1904_s21   ;;  %s1288_s20 = sphi %s1331_s20, %s1903_s20   ;;  %s1284_s19 = sphi %s1329_s19, %s1902_s19   ;;  %s1280_s18 = sphi %s1327_s18, %s1901_s18  }
   0xd   : > { %p48_p0 = scmp.ne.s32.totalorder %s1284_s19, %s1280_s18  ;;  %p49_p1 = scmp.eq.s32.totalorder %s1348_s22, 0 }
   0xe   : > { %p119_p2 = scmp.eq.s32.totalorder %s1348_s22, 1  ;;  %p125_p3 = scmp.eq.s32.totalorder %s1873_s23, 1 }
   0xf   : > { %p1359_p4 = por %p49_p1, %p48_p0  ;;  %p954_p5 = scmp.ge.s32.totalorder %s1292_s21, 1 }
  0x10   : > { %p1364_p6 = por %p125_p3, %p48_p0  ;;  %p184_p7 = scmp.lt.s32.totalorder %s1292_s21, 3 }
  0x11   : > { %s1885_s2 = sld [smem:[#allocation21_spill]]  ;;  %s1294_s30 = smov [#allocation7]  }
  0x12   : > { %p1372_p8 = pnand %p954_p5, %p184_p7  ;;  %s197_s6 = sshll.u32 %s1294_s30, 4  ;;  %s198_s6 = int_to_ptr.vmem [resolvable:$true] %s197_s6 }
  0x13   : > { %s1382_s7 = sadd.s32 1, %s1292_s21   ;;  %s1874_s8 = smov 256  }
  0x14   : > { %p1000_p9 = pneg %p1372_p8  ;;  %s1876_s9 = smov 16  }
  0x15   : > { %s32_s10 = ssub.s32 %s1292_s21, %s1382_s7  ;;  %s35_s11 = sadd.s32 1, %s1288_s20 }
  0x16   : > { %p1001_p10 = pnand %p1000_p9, %p49_p1  ;;  %p33_p12 = scmp.eq.s32.totalorder %s32_s10, 0 }
  0x17   : > { %s195_s28 = sshll.u32 %s1885_s2, 4  ;;  %p42_p13 = scmp.ne.s32.totalorder %s1288_s20, %s1284_s19  ;;  %s196_s28 = int_to_ptr.hbm [resolvable:$true] %s195_s28 }
  0x18   : > { %1003 = dma.hbm_to_vmem [thread:$0]  (!%p1001_p10), %s196_s28, 8192, %s198_s6, [#allocation6], %s1874_s8, %s1874_s8, %s1876_s9  }
  0x19   : > { %p43_p0 = scmp.eq.s32.totalorder %s1292_s21, 0  ;;  %p1022_p3 = scmp.lt.s32.totalorder %s1292_s21, 2 }
  0x1a   : > { %s1395_s12 = scalar_select %p33_p12, %s1288_s20, %s35_s11  }
  0x1b   : > { %p44_p5 = por %p43_p0, %p42_p13  ;;  %p1399_p7 = por %p119_p2, %p42_p13 }
  0x1c   : > { %1887 = sst [smem:[#allocation17_spill]] %s1395_s12  ;;  %s211_s14 = sand.u32 1, %s1288_s20  }
  0x1d   : > { %s978_s15 = sshll.u32 %s1292_s21, 5  ;;  %s957_s16 = sshll.u32 %s211_s14, 5 }
  0x1e   : > { %s1889_s0 = sld [smem:[#allocation20_spill]]  ;;  %s215_s30 = scalar_lea.vmem [#allocation2], %s957_s16 }
  0x1f   : > { %s223_s6 = sshll.u32 %s215_s30, 4  ;;  %p1410_p9 = pnand %p1022_p3, %p44_p5  ;;  %s224_s6 = int_to_ptr.vmem [resolvable:$true] %s223_s6 }
  0x20   : > { %s242_s8 = scalar_lea.hbm %s1868_s1, %s978_s15  ;;  %s237_s9 = scalar_lea.vmem [#allocation5], %s957_s16 }
  0x21   : > { %s1417_s2 = sshll.u32 %s237_s9, 4  ;;  %s243_s17 = sshll.u32 %s242_s8, 4  ;;  %s244_s17 = int_to_ptr.hbm [resolvable:$true] %s243_s17  ;;  %s246_s2 = int_to_ptr.vmem [resolvable:$true] %s1417_s2 }
  0x22   : > { %s212_s26 = scalar_lea.sflag [#allocation3], %s211_s14  ;;  %p1102_p10 = pneg %p1410_p9 }
  0x24   : > { %s220_s27 = scalar_lea.hbm %s1889_s0, %s978_s15  ;;  %s1105_s11 = scalar_lea.hbm %s1889_s0, 64 }
  0x25   : > { %s221_s28 = sshll.u32 %s220_s27, 4  ;;  %s222_s28 = int_to_ptr.hbm [resolvable:$true] %s221_s28 }
  0x26   : > { %s1098_s27 = sshra.s32 %s222_s28, 4  ;;  %s1099_s27 = int_to_ptr.hbm [resolvable:$true] %s1098_s27 }
  0x27   : > { %s1100_s30 = scalar_lea.hbm %s1099_s27, 32  ;;  %p1106_p0 = scmp.lt.s32.totalorder %s1099_s27, %s1889_s0 }
  0x28   : > { %p1101_p2 = scmp.ne.s32.totalorder %s1099_s27, %s1100_s30  ;;  %p1107_p3 = scmp.lt.s32.totalorder %s1105_s11, %s1100_s30 }
  0x2a   : > { %p1103_p12 = pnand %p1102_p10, %p1101_p2  ;;  %p1108_p5 = por %p1107_p3, %p1106_p0 }
  0x2c   : > { %p1104_p13 = pneg %p1103_p12 }
  0x2e   : > { %p1109_p11 = pnand %p1108_p5, %p1104_p13 }
  0x30   : > { %1112 = shalt.err (!%p1109_p11)
}
  0x31   : > { %s1891_s8 = smov 16   ;;  %s1892_s9 = smov 256  }
  0x32   : > { %1007 = dma.hbm_to_vmem [thread:$0]  (!%p1410_p9), %s222_s28, 512, %s224_s6, %s212_s26, %s1892_s9, %s1892_s9, %s1891_s8  }
  0x33   : > { %s233_s12 = sand.u32 1, %s1292_s21   ;;  %s1128_s23 = sshra.s32 %s244_s17, 4  ;;  %s1129_s23 = int_to_ptr.hbm [resolvable:$true] %s1128_s23 }
  0x34   : > { %s234_s14 = scalar_lea.sflag [#allocation6], %s233_s12  ;;  %s1130_s27 = scalar_lea.hbm %s1129_s23, 32 }
  0x35   : > { %p1131_p2 = scmp.ne.s32.totalorder %s1129_s23, %s1130_s27  ;;  %s1135_s15 = scalar_lea.hbm %s1868_s1, 64 }
  0x36   : > { %p1136_p13 = scmp.lt.s32.totalorder %s1129_s23, %s1868_s1  ;;  %p1137_p0 = scmp.lt.s32.totalorder %s1135_s15, %s1130_s27 }
  0x37   : > { %p1133_p11 = pnand %p1131_p2, %p1102_p10 }
  0x38   : > { %p1138_p3 = por %p1137_p0, %p1136_p13 }
  0x39   : > { %p1134_p12 = pneg %p1133_p11 }
  0x3b   : > { %p1139_p5 = pnand %p1138_p3, %p1134_p12 }
  0x3d   : > { %1142 = shalt.err (!%p1139_p5)
}
  0x3e   : > { %1010 = dma.hbm_to_vmem [thread:$0]  (!%p1410_p9), %s244_s17, 512, %s246_s2, %s234_s14, %s1892_s9, %s1892_s9, %s1891_s8  }
  0x3f   : > { %257 = sbr.rel (%p1372_p8) target bundleno = 565 (0x235), region = 32 }
  0x44   : > { %s1454_s28 = sand.u32 1, %s1284_s19  }
  0x45   : > { %s964_s0 = sshll.u32 %s1454_s28, 5  ;;  %s260_s6 = scalar_lea.sflag [#allocation3], %s1454_s28 }
  0x46   : > { %s1458_s26 = scalar_lea.vmem [#allocation2], %s964_s0 }
  0x47   : > { %1259 = dma.done.wait (%p1359_p4), %s260_s6, 512  }
  0x48   : > { %1261 = vsyncadd (%p1359_p4), %s260_s6, 4294966784  ;;  %s1880_s2 = sand.u32 1, %s1348_s22   ;;  %s1467_s10 = scalar_lea.vmem [#allocation5], %s964_s0 }
  0x49   : > { %s270_s29 = scalar_lea.sflag [#allocation6], %s1880_s2 }
  0x4a   : > { %1263 = dma.done.wait (%p1359_p4), %s270_s29, 512  }
  0x4b   : > { %1265 = vsyncadd (%p1359_p4), %s270_s29, 4294966784 }
  0x4c   : > { %1267 = dma.done.wait (%p49_p1), [#allocation6], 8192  }
  0x4d   : > { %1269 = vsyncadd (%p49_p1), [#allocation6], 4294959104  ;;  %v1477_v0 = vld [vmem:[#allocation7 + $0xf0] sm:$0xff]  ;;  %v1481_v2 = vld [vmem:[#allocation7 + $0xf8] sm:$0xff]  ;;  %vm687_vm12 = vcmask 1040384   ;;  %s1782_s24 = sshll.u32 %s1348_s22, 3 }
  0x4e   : > { %v1479_v1 = vld [vmem:[#allocation7 + $0x1f0] sm:$0xff]  ;;  %393 = vmatpush.msra.mxu0 %v1477_v0  ;;  %v1485_v3 = vld [vmem:[#allocation7 + $0x1f8] sm:$0xff]  ;;  %v1487_v4 = vld [vmem:[#allocation7 + $0xe0] sm:$0xff]  ;;  %439 = vmatpush.msra.mxu2 %v1481_v2  ;;  %s1785_s17 = sshll.u32 %s1454_s28, 3  ;;  %s755_s12 = scalar_lea.hbm %s1870_s3, %s1782_s24 }
  0x4f   : > { %416 = vmatpush.msra.mxu1 %v1479_v1  ;;  %v1489_v5 = vld [vmem:[#allocation7 + $0x1e0] sm:$0xff]  ;;  %462 = vmatpush.msra.mxu3 %v1485_v3  ;;  %v1493_v6 = vld [vmem:[#allocation7 + $0xe8] sm:$0xff]  ;;  %v1497_v8 = vld [vmem:[#allocation7 + $0xd0] sm:$0xff]  ;;  %s306_s14 = scalar_lea.vmem [#allocation8], %s1785_s17  ;;  %s759_s27 = sshll.u32 %s755_s12, 4  ;;  %s760_s27 = int_to_ptr.hbm [resolvable:$true] %s759_s27 }
  0x50   : > { %v1495_v7 = vld [vmem:[#allocation7 + $0x1e8] sm:$0xff]  ;;  %394 = vmatpush.msra.mxu0 %v1487_v4  ;;  %v1501_v9 = vld [vmem:[#allocation7 + $0x1d0] sm:$0xff]  ;;  %v1503_v10 = vld [vmem:[#allocation7 + $0xd8] sm:$0xff]  ;;  %440 = vmatpush.msra.mxu2 %v1493_v6  ;;  %s757_s23 = sshll.u32 %s306_s14, 4  ;;  %s769_s16 = scalar_lea.hbm %s1871_s4, %s1782_s24  ;;  %s758_s23 = int_to_ptr.vmem [resolvable:$true] %s757_s23 }
  0x51   : > { %417 = vmatpush.msra.mxu1 %v1489_v5  ;;  %v1505_v11 = vld [vmem:[#allocation7 + $0x1d8] sm:$0xff]  ;;  %463 = vmatpush.msra.mxu3 %v1495_v7  ;;  %v1509_v12 = vld [vmem:[#allocation7 + $0xc0] sm:$0xff]  ;;  %v1515_v14 = vld [vmem:[#allocation7 + $0xc8] sm:$0xff]  ;;  %s735_s29 = scalar_lea.sflag [#allocation4], %s1454_s28 }
  0x52   : > { %v1511_v13 = vld [vmem:[#allocation7 + $0x1c0] sm:$0xff]  ;;  %395 = vmatpush.msra.mxu0 %v1497_v8  ;;  %v1517_v15 = vld [vmem:[#allocation7 + $0x1c8] sm:$0xff]  ;;  %441 = vmatpush.msra.mxu2 %v1503_v10  ;;  %v1521_v16 = vld [vmem:[#allocation7 + $0xb0] sm:$0xff] }
  0x53   : > { %418 = vmatpush.msra.mxu1 %v1501_v9  ;;  %464 = vmatpush.msra.mxu3 %v1505_v11  ;;  %v1523_v17 = vld [vmem:[#allocation7 + $0x1b0] sm:$0xff]  ;;  %v1527_v18 = vld [vmem:[#allocation7 + $0xb8] sm:$0xff]  ;;  %v1533_v20 = vld [vmem:[#allocation7 + $0xa0] sm:$0xff] }
  0x54   : > { %396 = vmatpush.msra.mxu0 %v1509_v12  ;;  %v1529_v19 = vld [vmem:[#allocation7 + $0x1b8] sm:$0xff]  ;;  %442 = vmatpush.msra.mxu2 %v1515_v14  ;;  %v1535_v21 = vld [vmem:[#allocation7 + $0x1a0] sm:$0xff]  ;;  %v1539_v22 = vld [vmem:[#allocation7 + $0xa8] sm:$0xff] }
  0x55   : > { %419 = vmatpush.msra.mxu1 %v1511_v13  ;;  %465 = vmatpush.msra.mxu3 %v1517_v15  ;;  %v1541_v23 = vld [vmem:[#allocation7 + $0x1a8] sm:$0xff]  ;;  %v1545_v24 = vld [vmem:[#allocation7 + $0x90] sm:$0xff]  ;;  %v1551_v26 = vld [vmem:[#allocation7 + $0x98] sm:$0xff] }
  0x56   : > { %397 = vmatpush.msra.mxu0 %v1521_v16  ;;  %443 = vmatpush.msra.mxu2 %v1527_v18  ;;  %v1547_v25 = vld [vmem:[#allocation7 + $0x190] sm:$0xff]  ;;  %v1553_v27 = vld [vmem:[#allocation7 + $0x198] sm:$0xff]  ;;  %v1557_v28 = vld [vmem:[#allocation7 + $0x80] sm:$0xff] }
  0x57   : > { %420 = vmatpush.msra.mxu1 %v1523_v17  ;;  %466 = vmatpush.msra.mxu3 %v1529_v19  ;;  %v1559_v29 = vld [vmem:[#allocation7 + $0x180] sm:$0xff]  ;;  %v1563_v30 = vld [vmem:[#allocation7 + $0x88] sm:$0xff]  ;;  %v1569_v32 = vld [vmem:[#allocation7 + $0x70] sm:$0xff] }
  0x58   : > { %398 = vmatpush.msra.mxu0 %v1533_v20  ;;  %444 = vmatpush.msra.mxu2 %v1539_v22  ;;  %v1565_v31 = vld [vmem:[#allocation7 + $0x188] sm:$0xff]  ;;  %v1571_v33 = vld [vmem:[#allocation7 + $0x170] sm:$0xff]  ;;  %v1575_v34 = vld [vmem:[#allocation7 + $0x78] sm:$0xff] }
  0x59   : > { %421 = vmatpush.msra.mxu1 %v1535_v21  ;;  %467 = vmatpush.msra.mxu3 %v1541_v23  ;;  %v1577_v35 = vld [vmem:[#allocation7 + $0x178] sm:$0xff]  ;;  %v1581_v36 = vld [vmem:[#allocation7 + $0x60] sm:$0xff]  ;;  %v1587_v38 = vld [vmem:[#allocation7 + $0x68] sm:$0xff] }
  0x5a   : > { %399 = vmatpush.msra.mxu0 %v1545_v24  ;;  %445 = vmatpush.msra.mxu2 %v1551_v26  ;;  %v1583_v37 = vld [vmem:[#allocation7 + $0x160] sm:$0xff]  ;;  %v1589_v39 = vld [vmem:[#allocation7 + $0x168] sm:$0xff]  ;;  %v1593_v40 = vld [vmem:[#allocation7 + $0x50] sm:$0xff] }
  0x5b   : > { %422 = vmatpush.msra.mxu1 %v1547_v25  ;;  %468 = vmatpush.msra.mxu3 %v1553_v27  ;;  %v1595_v41 = vld [vmem:[#allocation7 + $0x150] sm:$0xff]  ;;  %v1599_v42 = vld [vmem:[#allocation7 + $0x58] sm:$0xff]  ;;  %v1605_v44 = vld [vmem:[#allocation7 + $0x40] sm:$0xff] }
  0x5c   : > { %400 = vmatpush.msra.mxu0 %v1557_v28  ;;  %446 = vmatpush.msra.mxu2 %v1563_v30  ;;  %v1601_v43 = vld [vmem:[#allocation7 + $0x158] sm:$0xff]  ;;  %v1607_v45 = vld [vmem:[#allocation7 + $0x140] sm:$0xff]  ;;  %v1611_v46 = vld [vmem:[#allocation7 + $0x48] sm:$0xff] }
  0x5d   : > { %423 = vmatpush.msra.mxu1 %v1559_v29  ;;  %469 = vmatpush.msra.mxu3 %v1565_v31  ;;  %v1613_v47 = vld [vmem:[#allocation7 + $0x148] sm:$0xff]  ;;  %v1617_v48 = vld [vmem:[#allocation7 + $0x30] sm:$0xff]  ;;  %v1623_v50 = vld [vmem:[#allocation7 + $0x38] sm:$0xff] }
  0x5e   : > { %401 = vmatpush.msra.mxu0 %v1569_v32  ;;  %447 = vmatpush.msra.mxu2 %v1575_v34  ;;  %v1619_v49 = vld [vmem:[#allocation7 + $0x130] sm:$0xff]  ;;  %v1625_v51 = vld [vmem:[#allocation7 + $0x138] sm:$0xff]  ;;  %v1629_v52 = vld [vmem:[#allocation7 + $0x20] sm:$0xff] }
  0x5f   : > { %424 = vmatpush.msra.mxu1 %v1571_v33  ;;  %470 = vmatpush.msra.mxu3 %v1577_v35  ;;  %v1631_v53 = vld [vmem:[#allocation7 + $0x120] sm:$0xff]  ;;  %v1635_v54 = vld [vmem:[#allocation7 + $0x28] sm:$0xff]  ;;  %v1641_v56 = vld [vmem:[#allocation7 + $0x10] sm:$0xff] }
  0x60   : > { %402 = vmatpush.msra.mxu0 %v1581_v36  ;;  %448 = vmatpush.msra.mxu2 %v1587_v38  ;;  %1893 = vst [vmem:[#allocation18_spill] sm:$0xff] %v1631_v53  ;;  %v1637_v55 = vld [vmem:[#allocation7 + $0x128] sm:$0xff]  ;;  %v1643_v57 = vld [vmem:[#allocation7 + $0x110] sm:$0xff]  ;;  %v1647_v58 = vld [vmem:[#allocation7 + $0x18] sm:$0xff] }
  0x61   : > { %425 = vmatpush.msra.mxu1 %v1583_v37  ;;  %471 = vmatpush.msra.mxu3 %v1589_v39  ;;  %1894 = vst [vmem:[#allocation19_spill] sm:$0xff] %v1635_v54  ;;  %v1649_v59 = vld [vmem:[#allocation7 + $0x118] sm:$0xff]  ;;  %v1653_v60 = vld [vmem:[#allocation7] sm:$0xff]  ;;  %v1659_v62 = vld [vmem:[#allocation7 + $0x8] sm:$0xff] }
  0x62   : > { %403 = vmatpush.msra.mxu0 %v1593_v40  ;;  %449 = vmatpush.msra.mxu2 %v1599_v42  ;;  %v1655_v61 = vld [vmem:[#allocation7 + $0x100] sm:$0xff]  ;;  %v1661_v63 = vld [vmem:[#allocation7 + $0x108] sm:$0xff] }
  0x63   : > { %426 = vmatpush.msra.mxu1 %v1595_v41  ;;  %472 = vmatpush.msra.mxu3 %v1601_v43 }
  0x64   : > { %404 = vmatpush.msra.mxu0 %v1605_v44  ;;  %450 = vmatpush.msra.mxu2 %v1611_v46 }
  0x65   : > { %427 = vmatpush.msra.mxu1 %v1607_v45  ;;  %473 = vmatpush.msra.mxu3 %v1613_v47 }
  0x66   : > { %405 = vmatpush.msra.mxu0 %v1617_v48  ;;  %451 = vmatpush.msra.mxu2 %v1623_v50 }
  0x67   : > { %428 = vmatpush.msra.mxu1 %v1619_v49  ;;  %474 = vmatpush.msra.mxu3 %v1625_v51 }
  0x68   : > { %406 = vmatpush.msra.mxu0 %v1629_v52  ;;  %452 = vmatpush.msra.mxu2 %v1635_v54  ;;  %v322_v54 = vld [vmem:[%s1458_s26 + $0x8] sm:$0xff] }
  0x69   : > { %429 = vmatpush.msra.mxu1 %v1631_v53  ;;  %475 = vmatpush.msra.mxu3 %v1637_v55  ;;  %v321_v53 = vld [vmem:[%s1458_s26] sm:$0xff] }
  0x6a   : > { %407 = vmatpush.msra.mxu0 %v1641_v56  ;;  %453 = vmatpush.msra.mxu2 %v1647_v58 }
  0x6b   : > { %430 = vmatpush.msra.mxu1 %v1643_v57  ;;  %476 = vmatpush.msra.mxu3 %v1649_v59 }
  0x6c   : > { %408 = vmatpush.msra.mxu0 %v1653_v60  ;;  %454 = vmatpush.msra.mxu2 %v1659_v62 }
  0x6d   : > { %431 = vmatpush.msra.mxu1 %v1655_v61  ;;  %477 = vmatpush.msra.mxu3 %v1661_v63 }
  0x6e   : > { %409 = vmatmul.f32.vlgmr.msra.gmra.mxu0 %v321_v53  ;;  %432 = vmatmul.f32.vlgmr.msra.gmra.mxu1 %v322_v54 }
  0x6f   : > { %455 = vmatmul.f32.vlgmr.msra.gmra.mxu2 %v321_v53  ;;  %478 = vmatmul.f32.vlgmr.msra.gmra.mxu3 %v322_v54 }
  0x70   : > { %485 = vmatpush.msrb.mxu0 %v1477_v0  ;;  %508 = vmatpush.msrb.mxu1 %v1479_v1  ;;  %v323_v0 = vld [vmem:[%s1458_s26 + $0x10] sm:$0xff]  ;;  %v324_v1 = vld [vmem:[%s1458_s26 + $0x18] sm:$0xff]  ;;  %s783_s26 = scalar_lea.hbm %s1872_s5, %s1782_s24 }
  0x71   : > { %531 = vmatpush.msrb.mxu2 %v1481_v2  ;;  %554 = vmatpush.msrb.mxu3 %v1485_v3  ;;  %v1895_v2 = vld [vmem:[#allocation18_spill] sm:$0xff]  ;;  %v1896_v3 = vld [vmem:[#allocation19_spill] sm:$0xff] }
  0x72   : > { %486 = vmatpush.msrb.mxu0 %v1487_v4  ;;  %509 = vmatpush.msrb.mxu1 %v1489_v5  ;;  %v325_v4 = vld [vmem:[%s1467_s10] sm:$0xff]  ;;  %v326_v5 = vld [vmem:[%s1467_s10 + $0x8] sm:$0xff] }
  0x73   : > { %532 = vmatpush.msrb.mxu2 %v1493_v6  ;;  %555 = vmatpush.msrb.mxu3 %v1495_v7  ;;  %v327_v6 = vld [vmem:[%s1467_s10 + $0x10] sm:$0xff]  ;;  %v328_v7 = vld [vmem:[%s1467_s10 + $0x18] sm:$0xff]  ;;  %s1172_s10 = sshra.s32 %s760_s27, 4  ;;  %s1173_s10 = int_to_ptr.hbm [resolvable:$true] %s1172_s10 }
  0x74   : > { %487 = vmatpush.msrb.mxu0 %v1497_v8  ;;  %510 = vmatpush.msrb.mxu1 %v1501_v9  ;;  %s1174_s8 = scalar_lea.hbm %s1173_s10, 8  ;;  %p1179_p9 = scmp.lt.s32.totalorder %s1173_s10, %s1870_s3 }
  0x75   : > { %533 = vmatpush.msrb.mxu2 %v1503_v10  ;;  %556 = vmatpush.msrb.mxu3 %v1505_v11  ;;  %p1175_p1 = scmp.ne.s32.totalorder %s1173_s10, %s1174_s8 }
  0x76   : > { %488 = vmatpush.msrb.mxu0 %v1509_v12  ;;  %511 = vmatpush.msrb.mxu1 %v1511_v13 }
  0x77   : > { %534 = vmatpush.msrb.mxu2 %v1515_v14  ;;  %557 = vmatpush.msrb.mxu3 %v1517_v15  ;;  %p1176_p4 = pnand %p1175_p1, %p1399_p7 }
  0x78   : > { %412 = vmatmul.f32.gmra.mxu0 %v323_v0  ;;  %435 = vmatmul.f32.gmra.mxu1 %v324_v1 }
  0x79   : > { %458 = vmatmul.f32.gmra.mxu2 %v323_v0  ;;  %481 = vmatmul.f32.gmra.mxu3 %v324_v1  ;;  %p1177_p8 = pneg %p1176_p4 }
  0x7a   : > { %489 = vmatpush.msrb.mxu0 %v1521_v16  ;;  %512 = vmatpush.msrb.mxu1 %v1523_v17 }
  0x7b   : > { %535 = vmatpush.msrb.mxu2 %v1527_v18  ;;  %558 = vmatpush.msrb.mxu3 %v1529_v19 }
  0x7c   : > { %490 = vmatpush.msrb.mxu0 %v1533_v20  ;;  %513 = vmatpush.msrb.mxu1 %v1535_v21 }
  0x7d   : > { %536 = vmatpush.msrb.mxu2 %v1539_v22  ;;  %559 = vmatpush.msrb.mxu3 %v1541_v23 }
  0x7e   : > { %491 = vmatpush.msrb.mxu0 %v1545_v24  ;;  %514 = vmatpush.msrb.mxu1 %v1547_v25 }
  0x7f   : > { %537 = vmatpush.msrb.mxu2 %v1551_v26  ;;  %560 = vmatpush.msrb.mxu3 %v1553_v27 }
  0x80   : > { %492 = vmatpush.msrb.mxu0 %v1557_v28  ;;  %515 = vmatpush.msrb.mxu1 %v1559_v29 }
  0x81   : > { %538 = vmatpush.msrb.mxu2 %v1563_v30  ;;  %561 = vmatpush.msrb.mxu3 %v1565_v31 }
  0x82   : > { %493 = vmatpush.msrb.mxu0 %v1569_v32  ;;  %516 = vmatpush.msrb.mxu1 %v1571_v33 }
  0x83   : > { %539 = vmatpush.msrb.mxu2 %v1575_v34  ;;  %562 = vmatpush.msrb.mxu3 %v1577_v35 }
  0x84   : > { %494 = vmatpush.msrb.mxu0 %v1581_v36  ;;  %517 = vmatpush.msrb.mxu1 %v1583_v37 }
  0x85   : > { %540 = vmatpush.msrb.mxu2 %v1587_v38  ;;  %563 = vmatpush.msrb.mxu3 %v1589_v39 }
  0x86   : > { %495 = vmatpush.msrb.mxu0 %v1593_v40  ;;  %518 = vmatpush.msrb.mxu1 %v1595_v41 }
  0x87   : > { %541 = vmatpush.msrb.mxu2 %v1599_v42  ;;  %564 = vmatpush.msrb.mxu3 %v1601_v43 }
  0x88   : > { %496 = vmatpush.msrb.mxu0 %v1605_v44  ;;  %519 = vmatpush.msrb.mxu1 %v1607_v45 }
  0x89   : > { %542 = vmatpush.msrb.mxu2 %v1611_v46  ;;  %565 = vmatpush.msrb.mxu3 %v1613_v47 }
  0x8a   : > { %497 = vmatpush.msrb.mxu0 %v1617_v48  ;;  %520 = vmatpush.msrb.mxu1 %v1619_v49 }
  0x8b   : > { %543 = vmatpush.msrb.mxu2 %v1623_v50  ;;  %566 = vmatpush.msrb.mxu3 %v1625_v51 }
  0x8c   : > { %498 = vmatpush.msrb.mxu0 %v1629_v52  ;;  %521 = vmatpush.msrb.mxu1 %v1895_v2 }
  0x8d   : > { %544 = vmatpush.msrb.mxu2 %v1896_v3  ;;  %567 = vmatpush.msrb.mxu3 %v1637_v55 }
  0x8e   : > { %499 = vmatpush.msrb.mxu0 %v1641_v56  ;;  %522 = vmatpush.msrb.mxu1 %v1643_v57 }
  0x8f   : > { %545 = vmatpush.msrb.mxu2 %v1647_v58  ;;  %568 = vmatpush.msrb.mxu3 %v1649_v59 }
  0x90   : > { %500 = vmatpush.msrb.mxu0 %v1653_v60  ;;  %523 = vmatpush.msrb.mxu1 %v1655_v61 }
  0x91   : > { %546 = vmatpush.msrb.mxu2 %v1659_v62  ;;  %569 = vmatpush.msrb.mxu3 %v1661_v63 }
  0x92   : > { %501 = vmatmul.f32.vlgmr.msrb.gmra.mxu0 %v325_v4  ;;  %524 = vmatmul.f32.vlgmr.msrb.gmra.mxu1 %v326_v5 }
  0x93   : > { %547 = vmatmul.f32.vlgmr.msrb.gmra.mxu2 %v325_v4  ;;  %570 = vmatmul.f32.vlgmr.msrb.gmra.mxu3 %v326_v5 }
  0x9a   : > { %504 = vmatmul.f32.gmra.mxu0 %v327_v6  ;;  %527 = vmatmul.f32.gmra.mxu1 %v328_v7 }
  0x9b   : > { %550 = vmatmul.f32.gmra.mxu2 %v327_v6  ;;  %573 = vmatmul.f32.gmra.mxu3 %v328_v7 }
  0xeb   : > { %v410_v8 = vpop.f32.mrf.mxu0  ;;  %v433_v9 = vpop.f32.mrf.mxu1 }
  0xec   : > { %v1741_v12 = vadd.f32 %v433_v9, %v410_v8 }
  0xee   : > { %v577_v16 = vmul.f32 %v1741_v12, %v1741_v12 }
  0xf2   : > { %v456_v10 = vpop.f32.mrf.mxu2  ;;  %v479_v11 = vpop.f32.mrf.mxu3 }
  0xf3   : > { %v1749_v18 = vadd.f32 %v479_v11, %v456_v10 }
  0xf5   : > { %v413_v13 = vpop.f32.mrf.mxu0  ;;  %v436_v14 = vpop.f32.mrf.mxu1  ;;  %v578_v23 = vmul.f32 %v1749_v18, %v1749_v18 }
  0xf6   : > { %v1743_v15 = vadd.f32 %v436_v14, %v413_v13 }
  0xf8   : > { %v579_v17 = vmul.f32 %v1743_v15, %v1743_v15 }
  0xfa   : > { %v581_v21 = vadd.f32 %v579_v17, %v577_v16 }
  0xfc   : > { %v459_v19 = vpop.f32.mrf.mxu2  ;;  %v482_v20 = vpop.f32.mrf.mxu3  ;;  %v582_v25 = vrot.slane %v581_v21, 4 }
  0xfd   : > { %v1751_v22 = vadd.f32 %v482_v20, %v459_v19 }
  0xfe   : > { %v583_v27 = vadd.f32 %v582_v25, %v581_v21 }
  0xff   : > { %v580_v24 = vmul.f32 %v1751_v22, %v1751_v22 }
 0x100   : > { %v584_v29 = vrot.slane %v583_v27, 2 }
 0x101   : > { %v588_v26 = vadd.f32 %v580_v24, %v578_v23 }
 0x102   : > { %v585_v31 = vadd.f32 %v584_v29, %v583_v27 }
 0x103   : > { %v589_v28 = vrot.slane %v588_v26, 4 }
 0x104   : > { %v586_v35 = vrot.slane %v585_v31, 1 }
 0x105   : > { %v590_v30 = vadd.f32 %v589_v28, %v588_v26 }
 0x106   : > { %v587_v37 = vadd.f32 %v586_v35, %v585_v31 }
 0x107   : > { %v591_v34 = vrot.slane %v590_v30, 2 }
 0x108   : > { %v595_v45 = vmax.f32 %v587_v37, 1e-24 }
 0x109   : > { %v592_v36 = vadd.f32 %v591_v34, %v590_v30 }
 0x10a   : > { %1060 = vrsqrt.f32 %v595_v45  ;;  %vm603_vm0 = vweird.f32 %v595_v45 }
 0x10b   : > { %v593_v43 = vrot.slane %v592_v36, 1 }
 0x10d   : > { %v594_v48 = vadd.f32 %v593_v43, %v592_v36 }
 0x10f   : > { %v502_v32 = vpop.f32.mrf.mxu0  ;;  %v525_v33 = vpop.f32.mrf.mxu1  ;;  %v596_v55 = vmax.f32 %v594_v48, 1e-24 }
 0x110   : > { %v1757_v38 = vadd.f32 %v525_v33, %v502_v32  ;;  %v1061_v60 = vpop.eup %1060 }
 0x111   : > { %1062 = vrsqrt.f32 %v596_v55  ;;  %v598_v0 = vmul.f32 %v1061_v60, %v595_v45  ;;  %vm604_vm1 = vweird.f32 %v1061_v60  ;;  %vm613_vm7 = vweird.f32 %v596_v55 }
 0x112   : > { %v617_v46 = vmul.f32 %v1757_v38, %v1757_v38  ;;  %vm605_vm2 = vmor %vm603_vm0, %vm604_vm1 }
 0x113   : > { %v599_v6 = vmul.f32 %v1061_v60, %v598_v0 }
 0x115   : > { %v600_v11 = vmul.f32 0.5, %v599_v6 }
 0x116   : > { %v548_v39 = vpop.f32.mrf.mxu2  ;;  %v571_v40 = vpop.f32.mrf.mxu3 }
 0x117   : > { %v505_v41 = vpop.f32.mrf.mxu0  ;;  %v528_v42 = vpop.f32.mrf.mxu1  ;;  %v1765_v50 = vadd.f32 %v571_v40, %v548_v39  ;;  %v601_v19 = vsub.f32 1.5, %v600_v11 }
 0x118   : > { %v1759_v44 = vadd.f32 %v528_v42, %v505_v41  ;;  %v1063_v5 = vpop.eup %1062 }
 0x119   : > { %v618_v57 = vmul.f32 %v1765_v50, %v1765_v50  ;;  %v608_v9 = vmul.f32 %v1063_v5, %v596_v55  ;;  %v602_v24 = vmul.f32 %v1061_v60, %v601_v19  ;;  %vm614_vm6 = vweird.f32 %v1063_v5 }
 0x11a   : > { %v619_v47 = vmul.f32 %v1759_v44, %v1759_v44  ;;  %vm615_vm8 = vmor %vm613_vm7, %vm614_vm6 }
 0x11b   : > { %v609_v14 = vmul.f32 %v1063_v5, %v608_v9  ;;  %v606_v29 = vsel %vm605_vm2, %v1061_v60, %v602_v24 }
 0x11c   : > { %v621_v49 = vadd.f32 %v619_v47, %v617_v46  ;;  %v657_v33 = vmul.f32 %v606_v29, %v1741_v12  ;;  %v659_v36 = vmul.f32 %v606_v29, %v1743_v15 }
 0x11d   : > { %v610_v21 = vmul.f32 0.5, %v609_v14 }
 0x11e   : > { %v622_v51 = vrot.slane %v621_v49, 4  ;;  %v551_v52 = vpop.f32.mrf.mxu2  ;;  %v574_v53 = vpop.f32.mrf.mxu3 }
 0x11f   : > { %v1767_v54 = vadd.f32 %v574_v53, %v551_v52  ;;  %v611_v27 = vsub.f32 1.5, %v610_v21 }
 0x120   : > { %v623_v56 = vadd.f32 %v622_v51, %v621_v49 }
 0x121   : > { %v620_v58 = vmul.f32 %v1767_v54, %v1767_v54  ;;  %v612_v34 = vmul.f32 %v1063_v5, %v611_v27 }
 0x122   : > { %v624_v59 = vrot.slane %v623_v56, 2 }
 0x123   : > { %v628_v61 = vadd.f32 %v620_v58, %v618_v57  ;;  %v616_v45 = vsel %vm615_vm8, %v1063_v5, %v612_v34 }
 0x124   : > { %v625_v62 = vadd.f32 %v624_v59, %v623_v56  ;;  %v658_v15 = vmul.f32 %v616_v45, %v1749_v18 }
 0x125   : > { %v629_v63 = vrot.slane %v628_v61, 4 }
 0x126   : > { %v626_v1 = vrot.slane %v625_v62, 1 }
 0x127   : > { %v630_v2 = vadd.f32 %v629_v63, %v628_v61 }
 0x128   : > { %v627_v3 = vadd.f32 %v626_v1, %v625_v62 }
 0x129   : > { %v631_v4 = vrot.slane %v630_v2, 2 }
 0x12a   : > { %v635_v7 = vmax.f32 %v627_v3, 1e-24 }
 0x12b   : > { %v632_v8 = vadd.f32 %v631_v4, %v630_v2 }
 0x12c   : > { %1064 = vrsqrt.f32 %v635_v7  ;;  %vm643_vm4 = vweird.f32 %v635_v7 }
 0x12d   : > { %v633_v10 = vrot.slane %v632_v8, 1 }
 0x12f   : > { %v634_v13 = vadd.f32 %v633_v10, %v632_v8 }
 0x131   : > { %v636_v16 = vmax.f32 %v634_v13, 1e-24 }
 0x132   : > { %v1065_v17 = vpop.eup %1064 }
 0x133   : > { %v638_v20 = vmul.f32 %v1065_v17, %v635_v7  ;;  %1066 = vrsqrt.f32 %v636_v16  ;;  %vm644_vm3 = vweird.f32 %v1065_v17  ;;  %vm653_vm10 = vweird.f32 %v636_v16 }
 0x134   : > { %vm645_vm5 = vmor %vm643_vm4, %vm644_vm3 }
 0x135   : > { %v639_v23 = vmul.f32 %v1065_v17, %v638_v20 }
 0x137   : > { %v640_v25 = vmul.f32 0.5, %v639_v23 }
 0x139   : > { %v1067_v26 = vpop.eup %1066  ;;  %v641_v28 = vsub.f32 1.5, %v640_v25 }
 0x13a   : > { %v648_v30 = vmul.f32 %v1067_v26, %v636_v16  ;;  %vm654_vm9 = vweird.f32 %v1067_v26 }
 0x13b   : > { %v642_v31 = vmul.f32 %v1065_v17, %v641_v28  ;;  %vm655_vm11 = vmor %vm653_vm10, %vm654_vm9 }
 0x13c   : > { %v649_v32 = vmul.f32 %v1067_v26, %v648_v30 }
 0x13d   : > { %v646_v35 = vsel %vm645_vm5, %v1065_v17, %v642_v31 }
 0x13e   : > { %v661_v37 = vmul.f32 %v646_v35, %v1757_v38  ;;  %v663_v39 = vmul.f32 %v646_v35, %v1759_v44  ;;  %v650_v40 = vmul.f32 0.5, %v649_v32  ;;  %v660_v38 = vmul.f32 %v616_v45, %v1751_v22 }
 0x140   : > { %v665_v41 = vsub.f32 %v657_v33, %v661_v37  ;;  %v667_v42 = vsub.f32 %v659_v36, %v663_v39  ;;  %v651_v43 = vsub.f32 1.5, %v650_v40 }
 0x142   : > { %v669_v46 = vmul.f32 %v665_v41, %v665_v41  ;;  %v671_v47 = vmul.f32 %v667_v42, %v667_v42  ;;  %v652_v12 = vmul.f32 %v1067_v26, %v651_v43 }
 0x144   : > { %v673_v48 = vadd.f32 %v671_v47, %v669_v46  ;;  %v656_v49 = vsel %vm655_vm11, %v1067_v26, %v652_v12 }
 0x145   : > { %v662_v44 = vmul.f32 %v656_v49, %v1765_v50  ;;  %v664_v51 = vmul.f32 %v656_v49, %v1767_v54 }
 0x146   : > { %v674_v52 = vrot.slane %v673_v48, 4 }
 0x147   : > { %v666_v53 = vsub.f32 %v658_v15, %v662_v44  ;;  %v668_v55 = vsub.f32 %v660_v38, %v664_v51 }
 0x148   : > { %v675_v56 = vadd.f32 %v674_v52, %v673_v48 }
 0x149   : > { %v670_v57 = vmul.f32 %v666_v53, %v666_v53  ;;  %v672_v58 = vmul.f32 %v668_v55, %v668_v55 }
 0x14a   : > { %v676_v59 = vrot.slane %v675_v56, 2 }
 0x14b   : > { %v680_v60 = vadd.f32 %v672_v58, %v670_v57 }
 0x14c   : > { %v677_v61 = vadd.f32 %v676_v59, %v675_v56 }
 0x14d   : > { %v681_v62 = vrot.slane %v680_v60, 4 }
 0x14e   : > { %v678_v63 = vrot.slane %v677_v61, 1 }
 0x14f   : > { %v682_v0 = vadd.f32 %v681_v62, %v680_v60 }
 0x150   : > { %v679_v1 = vadd.f32 %v678_v63, %v677_v61 }
 0x151   : > { %v683_v18 = vrot.slane %v682_v0, 2 }
 0x152   : > { %v700_v3 = vmul.f32 %v679_v1, %v679_v1  ;;  %v688_v54 = vsel %vm687_vm12, %v679_v1, 0.0 }
 0x153   : > { %v684_v2 = vadd.f32 %v683_v18, %v682_v0 }
 0x154   : > { %v714_v6 = vmul.f32 %v700_v3, %v679_v1  ;;  %v702_v14 = vsel %vm687_vm12, %v700_v3, 0.0 }
 0x155   : > { %v685_v22 = vrot.slane %v684_v2, 1 }
 0x156   : > { %v716_v9 = vsel %vm687_vm12, %v714_v6, 0.0 }
 0x157   : > { %v686_v50 = vadd.f32 %v685_v22, %v684_v2 }
 0x159   : > { %v689_v4 = vsel %vm687_vm12, %v686_v50, 0.0  ;;  %v701_v5 = vmul.f32 %v686_v50, %v686_v50 }
 0x15a   : > { %v690_v7 = vadd.f32 %v689_v4, %v688_v54 }
 0x15b   : > { %v715_v8 = vmul.f32 %v701_v5, %v686_v50  ;;  %v703_v13 = vsel %vm687_vm12, %v701_v5, 0.0 }
 0x15c   : > { %691 = vadd.xlane.f32.xlu0 %v690_v7  ;;  %v704_v16 = vadd.f32 %v703_v13, %v702_v14 }
 0x15d   : > { %v717_v10 = vsel %vm687_vm12, %v715_v8, 0.0 }
 0x15e   : > { %v718_v11 = vadd.f32 %v717_v10, %v716_v9 }
 0x160   : > { %719 = vadd.xlane.f32.xlu1 %v718_v11 }
 0x164   : > { %705 = vadd.xlane.f32.xlu0 %v704_v16 }
 0x1cf   : > { %v692_v17 = vpop.xlane.xlu0 %691 }
 0x1d0   : > { %v693_v19 = vrot.slane %v692_v17, 4 }
 0x1d2   : > { %v694_v20 = vadd.f32 %v693_v19, %v692_v17 }
 0x1d3   : > { %v720_v21 = vpop.xlane.xlu1 %719 }
 0x1d4   : > { %v695_v23 = vrot.slane %v694_v20, 2  ;;  %v721_v24 = vrot.slane %v720_v21, 4 }
 0x1d6   : > { %v722_v25 = vadd.f32 %v721_v24, %v720_v21  ;;  %v696_v26 = vadd.f32 %v695_v23, %v694_v20 }
 0x1d7   : > { %v706_v27 = vpop.xlane.xlu0 %705 }
 0x1d8   : > { %v723_v28 = vrot.slane %v722_v25, 2  ;;  %v707_v29 = vrot.slane %v706_v27, 4  ;;  %v697_v30 = vrot.slane %v696_v26, 1 }
 0x1da   : > { %v708_v31 = vadd.f32 %v707_v29, %v706_v27  ;;  %v698_v32 = vadd.f32 %v697_v30, %v696_v26  ;;  %v724_v33 = vadd.f32 %v723_v28, %v722_v25 }
 0x1dc   : > { %v709_v34 = vrot.slane %v708_v31, 2  ;;  %980 = vpush %v698_v32  ;;  %v725_v36 = vrot.slane %v724_v33, 1 }
 0x1de   : > { %v710_v35 = vadd.f32 %v709_v34, %v708_v31  ;;  %v726_v40 = vadd.f32 %v725_v36, %v724_v33 }
 0x1e0   : > { %v711_v37 = vrot.slane %v710_v35, 1 }
 0x1e2   : > { %v712_v39 = vadd.f32 %v711_v37, %v710_v35 }
 0x1e4   : > { %982 = vpush %v712_v39 }
 0x1e5   : > { %984 = vpush %v726_v40 }
 0x20d   : > { %s981_s30 = spop %980 }
 0x20e   : > { %v728_v41 = vstv %s981_s30 }
 0x20f   : > { %729 = vst [vmem:[%s306_s14] sm:$0xff] %v728_v41  ;;  %s1178_s14 = scalar_lea.hbm %s1870_s3, 16 }
 0x210   : > { %p1180_p10 = scmp.lt.s32.totalorder %s1178_s14, %s1174_s8 }
 0x212   : > { %p1181_p2 = por %p1180_p10, %p1179_p9 }
 0x214   : > { %p1182_p11 = pnand %p1181_p2, %p1177_p8 }
 0x216   : > { %1185 = shalt.err (!%p1182_p11)
}
 0x217   : > { %994 = dma.vmem_to_hbm [thread:$0]  (%p1399_p7), %s758_s23, 128, %s760_s27, %s735_s29  }
 0x218   : > { %s320_s28 = scalar_lea.vmem [#allocation11], %s1785_s17  ;;  %s313_s11 = scalar_lea.vmem [#allocation9], %s1785_s17 }
 0x219   : > { %s1812_s24 = sshll.u32 %s320_s28, 4  ;;  %s771_s15 = sshll.u32 %s313_s11, 4  ;;  %s786_s24 = int_to_ptr.vmem [resolvable:$true] %s1812_s24  ;;  %s772_s15 = int_to_ptr.vmem [resolvable:$true] %s771_s15 }
 0x21a   : > { %s773_s0 = sshll.u32 %s769_s16, 4  ;;  %s1815_s6 = sshll.u32 %s783_s26, 4  ;;  %s774_s0 = int_to_ptr.hbm [resolvable:$true] %s773_s0  ;;  %s788_s6 = int_to_ptr.hbm [resolvable:$true] %s1815_s6 }
 0x21b   : > { %s983_s2 = spop %982  ;;  %s1897_s23 = sand.u32 1, %s1348_s22  }
 0x21c   : > { %v730_v42 = vstv %s983_s2  ;;  %s985_s10 = spop %984  ;;  %s740_s27 = scalar_lea.sflag [#allocation10], %s1897_s23 }
 0x21d   : > { %731 = vst [vmem:[%s313_s11] sm:$0xff] %v730_v42  ;;  %v732_v43 = vstv %s985_s10  ;;  %s1200_s29 = sshra.s32 %s774_s0, 4  ;;  %s1206_s8 = scalar_lea.hbm %s1871_s4, 16  ;;  %s1201_s29 = int_to_ptr.hbm [resolvable:$true] %s1200_s29 }
 0x21e   : > { %733 = vst [vmem:[%s320_s28] sm:$0xff] %v732_v43  ;;  %s1202_s17 = scalar_lea.hbm %s1201_s29, 8  ;;  %p1207_p3 = scmp.lt.s32.totalorder %s1201_s29, %s1871_s4 }
 0x21f   : > { %p1203_p12 = scmp.ne.s32.totalorder %s1201_s29, %s1202_s17  ;;  %p1208_p5 = scmp.lt.s32.totalorder %s1206_s8, %s1202_s17 }
 0x221   : > { %p1204_p13 = pnand %p1203_p12, %p1399_p7  ;;  %p1209_p1 = por %p1208_p5, %p1207_p3 }
 0x223   : > { %p1205_p0 = pneg %p1204_p13 }
 0x225   : > { %p1210_p4 = pnand %p1209_p1, %p1205_p0 }
 0x227   : > { %1213 = shalt.err (!%p1210_p4)
}
 0x228   : > { %995 = dma.vmem_to_hbm [thread:$0]  (%p1399_p7), %s772_s15, 128, %s774_s0, %s740_s27  }
 0x229   : > { %s1228_s22 = sshra.s32 %s788_s6, 4  ;;  %s1234_s11 = scalar_lea.hbm %s1872_s5, 16  ;;  %s1229_s22 = int_to_ptr.hbm [resolvable:$true] %s1228_s22 }
 0x22a   : > { %s1230_s14 = scalar_lea.hbm %s1229_s22, 8  ;;  %p1235_p2 = scmp.lt.s32.totalorder %s1229_s22, %s1872_s5 }
 0x22b   : > { %p1231_p8 = scmp.ne.s32.totalorder %s1229_s22, %s1230_s14  ;;  %p1236_p11 = scmp.lt.s32.totalorder %s1234_s11, %s1230_s14 }
 0x22d   : > { %p1232_p9 = pnand %p1231_p8, %p1399_p7  ;;  %p1237_p12 = por %p1236_p11, %p1235_p2 }
 0x22f   : > { %p1233_p10 = pneg %p1232_p9 }
 0x231   : > { %p1238_p13 = pnand %p1237_p12, %p1233_p10 }
 0x233   : > { %1241 = shalt.err (!%p1238_p13)
}
 0x234   : > { %996 = dma.vmem_to_hbm [thread:$0]  (%p1399_p7), %s786_s24, 128, %s788_s6, %s740_s27  }
 0x235 PF: > { %s799_s15 = sand.u32 1, %s1280_s18   ;;  %p1898_p0 = scmp.ge.s32.totalorder %s1292_s21, 2 }
 0x236   : > { %s800_s0 = scalar_lea.sflag [#allocation4], %s799_s15 }
 0x237   : > { %p1012_p3 = pnand %p1898_p0, %p1364_p6 }
 0x239   : > { %p1013_p5 = pneg %p1012_p3 }
 0x23b   : > { %1271 = dma.done.wait (%p1013_p5), %s800_s0, 128  }
 0x23c   : > { %1273 = vsyncadd (%p1013_p5), %s800_s0, 4294967168  ;;  %s1899_s23 = sadd.s32 4294967294, %s1292_s21  }
 0x23d   : > { %s809_s13 = sand.u32 1, %s1899_s23  }
 0x23e   : > { %s810_s29 = scalar_lea.sflag [#allocation10], %s809_s13 }
 0x23f   : > { %1275 = dma.done.wait (%p1013_p5), %s810_s29, 256  }
 0x240   : > { %1277 = vsyncadd (%p1013_p5), %s810_s29, 4294967040  ;;  %s1900_s24 = sld [smem:[#allocation17_spill]]  ;;  %p25_p7 = scmp.ge.s32.totalorder %s1382_s7, 4  }
 0x241   : > { %s1901_s18 = smov %s1284_s19  ;;  %s1902_s19 = smov %s1288_s20 }
 0x242   : > { %s1904_s21 = smov %s1382_s7  ;;  %27 = sbr.rel (!%p25_p7) target bundleno = 12 (0xc), region = 126 }
 0x246   : > { %s1903_s20 = smov %s1900_s24 }
 0x247   :  { %826 = vsyncpa [#allocation3], 1 }
 0x248   :  { %828 = vsyncpa [#allocation3 + $0x1], 1 }
 0x249   :  { %829 = vsyncpa [#allocation6], 1 }
 0x24a   :  { %831 = vsyncpa [#allocation6 + $0x1], 1 }
 0x24b   :  { %832 = vsyncpa [#allocation4], 1 }
 0x24c   :  { %834 = vsyncpa [#allocation4 + $0x1], 1 }
 0x24d   :  { %835 = vsyncpa [#allocation10], 1 }
 0x24e   :  { %837 = vsyncpa [#allocation10 + $0x1], 1 }

</bundles_post_ra>
